<compile_context>
chip_gen: v5e
topology: v5e:2x2
jax: 0.10.0
libtpu: 0.0.40
codegen_flags: <defaults>
</compile_context>

<pallas_src>
import math

import jax
import jax.numpy as jnp
from jax.experimental import pallas as pl
from jax.experimental.pallas import tpu as pltpu


def _round_up(x, m):
    return ((x + m - 1) // m) * m


def _cdiv(a, b):
    return -(-a // b)


# ---- exact (erf-based) GELU via A&S 7.1.26 polynomial (|err| <= 1.5e-7) -------------
_ERF_A1 = 0.254829592
_ERF_A2 = -0.284496736
_ERF_A3 = 1.421413741
_ERF_A4 = -1.453152027
_ERF_A5 = 1.061405429
_ERF_P = 0.3275911
_INV_SQRT2 = 0.7071067811865476


def _erf(x):
    ax = jnp.abs(x)
    t = 1.0 / (1.0 + _ERF_P * ax)
    poly = ((((_ERF_A5 * t + _ERF_A4) * t + _ERF_A3) * t + _ERF_A2) * t + _ERF_A1) * t
    y = 1.0 - poly * jnp.exp(-(ax * ax))
    return jnp.where(x < 0, -y, y)


def _gelu_exact(x):
    return 0.5 * x * (1.0 + _erf(x * _INV_SQRT2))


# ---- kernel --------------------------------------------------------------------------
def _ffn_kernel(x_ref, w1_ref, b1_ref, w2_ref, b2_ref, o_ref, acc_ref):
    # Grid: (i over M tiles [parallel], f over d_ff tiles [arbitrary, reduction]).
    # x block (tm, d_h) and the output block are index-constant along f (resident);
    # acc_ref is the f32 accumulator for the second matmul's d_ff reduction.
    f = pl.program_id(1)

    @pl.when(f == 0)
    def _():
        acc_ref[...] = jnp.zeros_like(acc_ref)

    # First projection: (tm, d_h) @ (d_h, tf)  -- weights already transposed wrapper-side.
    h = jnp.dot(x_ref[...], w1_ref[...], preferred_element_type=jnp.float32)
    h = _gelu_exact(h + b1_ref[...])                               # (tm, tf), f32 math

    # Second projection chunk: (tm, tf) @ (tf, d_h), accumulated in f32.
    acc_ref[...] += jnp.dot(h.astype(w2_ref.dtype), w2_ref[...],
                            preferred_element_type=jnp.float32)

    @pl.when(f == pl.num_programs(1) - 1)
    def _():
        o_ref[...] = (acc_ref[...] + b2_ref[...]).astype(o_ref.dtype)


# ---- tile-budget helpers ---------------------------------------------------------------
def _tpu_budget():
    """(per-core VMEM bytes, # TensorCores) with conservative fallbacks."""
    vmem = 64 << 20          # v7x per-TC VMEM: the smallest of v5e/v6e/v7x -> safe default
    cores = 2                # assume megacore; an even M-tile count is harmless on 1-TC chips
    try:
        info = pltpu.get_tpu_info()
        vmem = int(getattr(info, "vmem_capacity_bytes", vmem)) or vmem
        cores = int(getattr(info, "num_cores",
                            getattr(info, "tensorcores_per_chip", cores))) or cores
    except Exception:
        pass
    return int(vmem), max(1, int(cores))


# ---- wrapper -------------------------------------------------------------------------
def parallel_feed_forward(x, params, *, max_block_m=1024):
    """Pallas forward of ParallelFeedForward.

    x: (bz, len_q, d_h)
    params: 'w_1' (d_ff, d_h), 'b_1' (d_ff,), 'w_2' (d_h, d_ff), 'b_2' (d_h,)
            (d_ff here is the already-sharded local hidden dim, i.e. d_ff/world_size).
    """
    bz, len_q, d_h = x.shape
    w1, b1 = params["w_1"], params["b_1"]
    w2, b2 = params["w_2"], params["b_2"]
    d_ff = w1.shape[0]
    out_dtype = x.dtype

    # Keep activations and weights in one MXU dtype (mixed f32*bf16 forces a slow
    # multi-pass f32 matmul). The narrower dtype wins; accumulation stays f32.
    mxu_dtype = (w1.dtype if jnp.dtype(w1.dtype).itemsize <= jnp.dtype(x.dtype).itemsize
                 else x.dtype)
    x = x.astype(mxu_dtype)
    w1 = w1.astype(mxu_dtype)
    w2 = w2.astype(mxu_dtype)

    x_bytes = jnp.dtype(mxu_dtype).itemsize
    w_bytes = x_bytes
    o_bytes = jnp.dtype(out_dtype).itemsize
    sublane = max(8, 32 // x_bytes)          # 8 f32 / 16 bf16 / 32 int8-fp8

    vmem_bytes, num_cores = _tpu_budget()
    budget = int(vmem_bytes * 0.75)          # headroom for compiler-internal scratch

    # --- d_ff (reduction) tiling: prefer fully-resident weights ----------------------
    # With tf == d_ff the W1^T / W2^T BlockSpec indices are grid-invariant, so both
    # weights are DMA'd from HBM exactly once for the whole kernel (no per-M-tile
    # re-streaming). Otherwise tile d_ff in 256-multiples and pad d_ff wrapper-side.
    resident_w = 2 * 2 * d_h * d_ff * w_bytes            # W1^T + W2^T, double-buffered
    if resident_w <= budget // 2:
        d_ff_p, tf = d_ff, d_ff
    else:
        d_ff_p = _round_up(d_ff, 256)                    # full 256-wide MXU passes
        tf = 256
        for cand in (2048, 1024, 512, 256):
            if d_ff_p % cand == 0 and 2 * 2 * d_h * cand * w_bytes <= budget // 2:
                tf = cand
                break
    weight_vmem = 2 * 2 * d_h * tf * w_bytes
    bias_vmem = 2 * 8 * (tf + d_h) * 4                   # (1,*) blocks pad to 8 sublanes

    # --- M tiling: as big as the remaining VMEM allows (raises arithmetic intensity;
    # when weights are not resident they are re-read once per M tile, so fewer/larger
    # M tiles directly cut HBM traffic) ----------------------------------------------
    m = bz * len_q
    per_row = d_h * (2 * x_bytes + 2 * o_bytes + 4)      # x(2 buf) + out(2 buf) + f32 acc
    tm_cap = (budget - weight_vmem - bias_vmem) // per_row
    tm_cap = max(sublane, min(max_block_m, (tm_cap // sublane) * sublane))

    # Balanced tiles (no near-empty trailing tile); on multi-TC chips keep the tile
    # count a multiple of the core count so the "parallel" M axis splits evenly.
    nt = _cdiv(m, tm_cap)
    if num_cores > 1 and nt % num_cores != 0 and m >= num_cores * sublane:
        nt = _round_up(nt, num_cores)
    tm = _round_up(_cdiv(m, nt), sublane)
    mp = nt * tm

    # One-time layout plumbing (NOT per grid step inside the kernel).
    w1t = jnp.swapaxes(w1, 0, 1)                         # (d_h, d_ff):  h = x @ w1t
    w2t = jnp.swapaxes(w2, 0, 1)                         # (d_ff, d_h):  y = h @ w2t
    b1r = b1.reshape(1, d_ff).astype(jnp.float32)
    b2r = b2.reshape(1, d_h).astype(jnp.float32)
    if d_ff_p != d_ff:
        # Zero-pad d_ff: padded hidden units give gelu(0*x + 0) = 0 and contribute
        # 0 to the second matmul, so numerics are unchanged.
        pad = d_ff_p - d_ff
        w1t = jnp.pad(w1t, ((0, 0), (0, pad)))
        w2t = jnp.pad(w2t, ((0, pad), (0, 0)))
        b1r = jnp.pad(b1r, ((0, 0), (0, pad)))

    xm = x.reshape(m, d_h)
    if mp != m:
        xm = jnp.pad(xm, ((0, mp - m), (0, 0)))

    grid = (nt, d_ff_p // tf)

    # Explicit VMEM limit sized to the chosen tiles (default scoped limit would block
    # the large-tm / resident-weight tilings at realistic d_h / d_ff).
    vmem_need = (2 * tm * d_h * x_bytes                  # x blocks
                 + weight_vmem + bias_vmem               # weight + bias blocks
                 + 2 * tm * d_h * o_bytes                # out blocks
                 + tm * d_h * 4)                         # f32 accumulator scratch
    vmem_limit = int(min(vmem_bytes, max(32 << 20, int(vmem_need * 1.25) + (4 << 20))))

    cost = pl.CostEstimate(
        flops=4 * mp * d_h * d_ff_p,                     # two matmuls
        transcendentals=mp * d_ff_p,                     # one exp per hidden element
        bytes_accessed=(mp * d_h * (x_bytes + o_bytes)
                        + 2 * d_h * d_ff_p * w_bytes
                        + 4 * (d_ff_p + d_h)))

    # TODO(synk): if profiling shows exposed weight DMA when weights are not resident,
    # add pipeline_mode=pl.Buffered(3) on the W1^T / W2^T BlockSpecs.
    out = pl.pallas_call(
        _ffn_kernel,
        grid_spec=pltpu.PrefetchScalarGridSpec(
            num_scalar_prefetch=0,
            grid=grid,
            in_specs=[
                pl.BlockSpec((tm, d_h), lambda i, f: (i, 0)),   # x rows (resident over f)
                pl.BlockSpec((d_h, tf), lambda i, f: (0, f)),   # W1^T slab
                pl.BlockSpec((1, tf),   lambda i, f: (0, f)),   # b1 slab (f32)
                pl.BlockSpec((tf, d_h), lambda i, f: (f, 0)),   # W2^T slab
                pl.BlockSpec((1, d_h),  lambda i, f: (0, 0)),   # b2 (f32)
            ],
            out_specs=pl.BlockSpec((tm, d_h), lambda i, f: (i, 0)),
            scratch_shapes=[pltpu.VMEM((tm, d_h), jnp.float32)],
        ),
        out_shape=jax.ShapeDtypeStruct((mp, d_h), out_dtype),
        compiler_params=pltpu.CompilerParams(
            dimension_semantics=("parallel", "arbitrary"),
            vmem_limit_bytes=vmem_limit),
        cost_estimate=cost,
    )(xm, w1t, b1r, w2t, b2r)

    return out[:m].reshape(bz, len_q, d_h)


# ---- pure-JAX reference --------------------------------------------------------------
def _reference(x, params):
    h = x @ params["w_1"].T + params["b_1"]
    h = jax.nn.gelu(h, approximate=False)          # exact erf GELU, like torch F.gelu
    return h @ params["w_2"].T + params["b_2"]


if __name__ == "__main__":
    # Small shapes consistent with the module: d_h=32, d_ff=128, world_size=4 -> local 32.
    bz, len_q, d_h, d_ff, world_size = 2, 8, 32, 128, 4
    assert d_ff % world_size == 0
    d_ff_local = d_ff // world_size

    key = jax.random.PRNGKey(0)
    kx, kw1, kb1, kw2, kb2 = jax.random.split(key, 5)

    x = jax.random.normal(kx, (bz, len_q, d_h), dtype=jnp.float32)

    b_in = 1.0 / math.sqrt(d_h)            # nn.Linear(d_h, d_ff) init bound
    b_hid = 1.0 / math.sqrt(d_ff_local)    # nn.Linear(d_ff, d_h) init bound
    params = {
        "w_1": jax.random.uniform(kw1, (d_ff_local, d_h), jnp.float32, -b_in, b_in),
        "b_1": jax.random.uniform(kb1, (d_ff_local,), jnp.float32, -b_in, b_in),
        "w_2": jax.random.uniform(kw2, (d_h, d_ff_local), jnp.float32, -b_hid, b_hid),
        "b_2": jax.random.uniform(kb2, (d_h,), jnp.float32, -b_hid, b_hid),
    }

    out = parallel_feed_forward(x, params)
    out = jax.block_until_ready(out)

    ref = _reference(x, params)
    assert out.shape == (bz, len_q, d_h)
    assert jnp.allclose(out, ref, atol=1e-4, rtol=1e-4), "mismatch vs JAX reference"

    print("KERNEL_OK")
</pallas_src>

<mosaic_0001>
module attributes {stable_mosaic.version = 11 : i64} {
  func.func @_ffn_kernel(%arg0: i32, %arg1: i32, %arg2: memref<8x32xf32, #tpu.memory_space<vmem>>, %arg3: memref<32x32xf32, #tpu.memory_space<vmem>>, %arg4: memref<1x32xf32, #tpu.memory_space<vmem>>, %arg5: memref<32x32xf32, #tpu.memory_space<vmem>>, %arg6: memref<1x32xf32, #tpu.memory_space<vmem>>, %arg7: memref<8x32xf32, #tpu.memory_space<vmem>>, %arg8: memref<8x32xf32, #tpu.memory_space<vmem>>) attributes {dimension_semantics = [#tpu.dimension_semantics<parallel>, #tpu.dimension_semantics<arbitrary>], iteration_bounds = array<i64: 2, 1>, scalar_prefetch = 0 : i64, scratch_operands = 1 : i64, tpu.core_type = #tpu.core_type<tc>, window_params = [{transform_indices = @transform_0, window_bounds = array<i64: 8, 32>}, {transform_indices = @transform_1, window_bounds = array<i64: 32, 32>}, {transform_indices = @transform_2, window_bounds = array<i64: 1, 32>}, {transform_indices = @transform_3, window_bounds = array<i64: 32, 32>}, {pipeline_mode = #tpu.pipeline_mode<synchronous>, transform_indices = @transform_4, window_bounds = array<i64: 1, 32>}, {transform_indices = @transform_5, window_bounds = array<i64: 8, 32>}]} {
    %c0_i32 = arith.constant 0 : i32
    %0 = arith.cmpi eq, %arg1, %c0_i32 : i32
    %1 = arith.extui %0 : i1 to i32
    %c0_i32_0 = arith.constant 0 : i32
    %2 = arith.cmpi ne, %1, %c0_i32_0 : i32
    scf.if %2 {
      %cst_30 = arith.constant 0.000000e+00 : f32
      %57 = vector.broadcast %cst_30 : f32 to vector<8x32xf32>
      %c0_31 = arith.constant 0 : index
      %c0_32 = arith.constant 0 : index
      %58 = vector.load %arg8[%c0_31, %c0_32] : memref<8x32xf32, #tpu.memory_space<vmem>>, vector<8x32xf32>
      tpu.vector_store %arg8[%c0_31, %c0_32], %57 {strides = array<i32>} : memref<8x32xf32, #tpu.memory_space<vmem>>, vector<8x32xf32>,
    } else {
    }
    %c0 = arith.constant 0 : index
    %c0_1 = arith.constant 0 : index
    %3 = vector.load %arg2[%c0, %c0_1] : memref<8x32xf32, #tpu.memory_space<vmem>>, vector<8x32xf32>
    %c0_2 = arith.constant 0 : index
    %c0_3 = arith.constant 0 : index
    %4 = vector.load %arg3[%c0_2, %c0_3] : memref<32x32xf32, #tpu.memory_space<vmem>>, vector<32x32xf32>
    %cst = arith.constant dense<0.000000e+00> : vector<8x32xf32>
    %5 = tpu.matmul %3, %4, %cst {dimension_numbers = #tpu.dot_dimension_numbers<[1], [0], [0], [1], [0, 0, 1, 1], [], []>} : vector<8x32xf32>, vector<32x32xf32>, vector<8x32xf32> -> vector<8x32xf32>
    %c0_4 = arith.constant 0 : index
    %c0_5 = arith.constant 0 : index
    %6 = vector.load %arg4[%c0_4, %c0_5] : memref<1x32xf32, #tpu.memory_space<vmem>>, vector<1x32xf32>
    %7 = vector.broadcast %6 : vector<1x32xf32> to vector<8x32xf32>
    %8 = arith.addf %5, %7 : vector<8x32xf32>
    %cst_6 = arith.constant 5.000000e-01 : f32
    %9 = vector.broadcast %cst_6 : f32 to vector<8x32xf32>
    %10 = arith.mulf %9, %8 : vector<8x32xf32>
    %cst_7 = arith.constant 0.707106769 : f32
    %11 = vector.broadcast %cst_7 : f32 to vector<8x32xf32>
    %12 = arith.mulf %8, %11 : vector<8x32xf32>
    %13 = math.absf %12 : vector<8x32xf32>
    %cst_8 = arith.constant 0.327591091 : f32
    %14 = vector.broadcast %cst_8 : f32 to vector<8x32xf32>
    %15 = arith.mulf %14, %13 : vector<8x32xf32>
    %cst_9 = arith.constant 1.000000e+00 : f32
    %16 = vector.broadcast %cst_9 : f32 to vector<8x32xf32>
    %17 = arith.addf %16, %15 : vector<8x32xf32>
    %cst_10 = arith.constant 1.000000e+00 : f32
    %18 = vector.broadcast %cst_10 : f32 to vector<8x32xf32>
    %19 = arith.divf %18, %17 : vector<8x32xf32>
    %cst_11 = arith.constant 1.06140542 : f32
    %20 = vector.broadcast %cst_11 : f32 to vector<8x32xf32>
    %21 = arith.mulf %20, %19 : vector<8x32xf32>
    %cst_12 = arith.constant -1.45315206 : f32
    %22 = vector.broadcast %cst_12 : f32 to vector<8x32xf32>
    %23 = arith.addf %21, %22 : vector<8x32xf32>
    %24 = arith.mulf %23, %19 : vector<8x32xf32>
    %cst_13 = arith.constant 1.42141378 : f32
    %25 = vector.broadcast %cst_13 : f32 to vector<8x32xf32>
    %26 = arith.addf %24, %25 : vector<8x32xf32>
    %27 = arith.mulf %26, %19 : vector<8x32xf32>
    %cst_14 = arith.constant -0.284496725 : f32
    %28 = vector.broadcast %cst_14 : f32 to vector<8x32xf32>
    %29 = arith.addf %27, %28 : vector<8x32xf32>
    %30 = arith.mulf %29, %19 : vector<8x32xf32>
    %cst_15 = arith.constant 0.254829586 : f32
    %31 = vector.broadcast %cst_15 : f32 to vector<8x32xf32>
    %32 = arith.addf %30, %31 : vector<8x32xf32>
    %33 = arith.mulf %32, %19 : vector<8x32xf32>
    %34 = arith.mulf %13, %13 : vector<8x32xf32>
    %cst_16 = arith.constant 0.000000e+00 : f32
    %35 = vector.broadcast %cst_16 : f32 to vector<8x32xf32>
    %36 = arith.subf %35, %34 : vector<8x32xf32>
    %37 = math.exp %36 : vector<8x32xf32>
    %38 = arith.mulf %33, %37 : vector<8x32xf32>
    %cst_17 = arith.constant 1.000000e+00 : f32
    %39 = vector.broadcast %cst_17 : f32 to vector<8x32xf32>
    %40 = arith.subf %39, %38 : vector<8x32xf32>
    %cst_18 = arith.constant 0.000000e+00 : f32
    %41 = vector.broadcast %cst_18 : f32 to vector<8x32xf32>
    %42 = arith.cmpf olt, %12, %41 : vector<8x32xf32>
    %cst_19 = arith.constant 0.000000e+00 : f32
    %43 = vector.broadcast %cst_19 : f32 to vector<8x32xf32>
    %44 = arith.subf %43, %40 : vector<8x32xf32>
    %45 = arith.select %42, %44, %40 : vector<8x32xi1>, vector<8x32xf32>
    %cst_20 = arith.constant 1.000000e+00 : f32
    %46 = vector.broadcast %cst_20 : f32 to vector<8x32xf32>
    %47 = arith.addf %46, %45 : vector<8x32xf32>
    %48 = arith.mulf %10, %47 : vector<8x32xf32>
    %c0_21 = arith.constant 0 : index
    %c0_22 = arith.constant 0 : index
    %49 = vector.load %arg8[%c0_21, %c0_22] : memref<8x32xf32, #tpu.memory_space<vmem>>, vector<8x32xf32>
    %c0_23 = arith.constant 0 : index
    %c0_24 = arith.constant 0 : index
    %50 = vector.load %arg5[%c0_23, %c0_24] : memref<32x32xf32, #tpu.memory_space<vmem>>, vector<32x32xf32>
    %cst_25 = arith.constant dense<0.000000e+00> : vector<8x32xf32>
    %51 = tpu.matmul %48, %50, %cst_25 {dimension_numbers = #tpu.dot_dimension_numbers<[1], [0], [0], [1], [0, 0, 1, 1], [], []>} : vector<8x32xf32>, vector<32x32xf32>, vector<8x32xf32> -> vector<8x32xf32>
    %52 = arith.addf %49, %51 : vector<8x32xf32>
    %c0_26 = arith.constant 0 : index
    %c0_27 = arith.constant 0 : index
    %53 = vector.load %arg8[%c0_26, %c0_27] : memref<8x32xf32, #tpu.memory_space<vmem>>, vector<8x32xf32>
    tpu.vector_store %arg8[%c0_26, %c0_27], %52 {strides = array<i32>} : memref<8x32xf32, #tpu.memory_space<vmem>>, vector<8x32xf32>,
    %c0_i32_28 = arith.constant 0 : i32
    %54 = arith.cmpi eq, %arg1, %c0_i32_28 : i32
    %55 = arith.extui %54 : i1 to i32
    %c0_i32_29 = arith.constant 0 : i32
    %56 = arith.cmpi ne, %55, %c0_i32_29 : i32
    scf.if %56 {
      %c0_30 = arith.constant 0 : index
      %c0_31 = arith.constant 0 : index
      %57 = vector.load %arg8[%c0_30, %c0_31] : memref<8x32xf32, #tpu.memory_space<vmem>>, vector<8x32xf32>
      %c0_32 = arith.constant 0 : index
      %c0_33 = arith.constant 0 : index
      %58 = vector.load %arg6[%c0_32, %c0_33] : memref<1x32xf32, #tpu.memory_space<vmem>>, vector<1x32xf32>
      %59 = vector.broadcast %58 : vector<1x32xf32> to vector<8x32xf32>
      %60 = arith.addf %57, %59 : vector<8x32xf32>
      %c0_34 = arith.constant 0 : index
      %c0_35 = arith.constant 0 : index
      %61 = vector.load %arg7[%c0_34, %c0_35] : memref<8x32xf32, #tpu.memory_space<vmem>>, vector<8x32xf32>
      tpu.vector_store %arg7[%c0_34, %c0_35], %60 {strides = array<i32>} : memref<8x32xf32, #tpu.memory_space<vmem>>, vector<8x32xf32>,
    } else {
    }
    return
  }
  func.func @transform_0(%arg0: i32, %arg1: i32) -> (i32, i32) {
    %c0_i32 = arith.constant 0 : i32
    %c0_i32_0 = arith.constant 0 : i32
    return %arg0, %c0_i32 : i32, i32
  }
  func.func @transform_1(%arg0: i32, %arg1: i32) -> (i32, i32) {
    %c0_i32 = arith.constant 0 : i32
    %c0_i32_0 = arith.constant 0 : i32
    return %c0_i32, %arg1 : i32, i32
  }
  func.func @transform_2(%arg0: i32, %arg1: i32) -> (i32, i32) {
    %c0_i32 = arith.constant 0 : i32
    %c0_i32_0 = arith.constant 0 : i32
    return %c0_i32, %arg1 : i32, i32
  }
  func.func @transform_3(%arg0: i32, %arg1: i32) -> (i32, i32) {
    %c0_i32 = arith.constant 0 : i32
    %c0_i32_0 = arith.constant 0 : i32
    return %arg1, %c0_i32 : i32, i32
  }
  func.func @transform_4(%arg0: i32, %arg1: i32) -> (i32, i32) {
    %c0_i32 = arith.constant 0 : i32
    %c0_i32_0 = arith.constant 0 : i32
    %c0_i32_1 = arith.constant 0 : i32
    return %c0_i32, %c0_i32_0 : i32, i32
  }
  func.func @transform_5(%arg0: i32, %arg1: i32) -> (i32, i32) {
    %c0_i32 = arith.constant 0 : i32
    %c0_i32_0 = arith.constant 0 : i32
    return %arg0, %c0_i32 : i32, i32
  }
}

</mosaic_0001>

<bundles_post_ra>
// kernel: tpu_custom_call.1
= control target key start
LH: loop header
LB: loop body
LE: loop exit
PB: predicated region body
PF: predicated region fallthrough
CT: control target
= control target key end

     0   :  { %10 = vsyncpa [#allocation4], 0  ;;  %s1049_s0 = inlined_call_operand.hbm [shape: f32[16,32], index: 0, kind: input, shape index: {}]   ;;  %s1050_s1 = inlined_call_operand.hbm [shape: f32[32,32], index: 1, kind: input, shape index: {}]   ;;  %s1051_s2 = inlined_call_operand.vmem [shape: f32[1,32], index: 2, kind: input, shape index: {}]   ;;  %s1052_s3 = inlined_call_operand.hbm [shape: f32[32,32], index: 3, kind: input, shape index: {}]   ;;  %s1053_s4 = inlined_call_operand.vmem [shape: f32[1,32], index: 4, kind: input, shape index: {}]   ;;  %s1054_s5 = inlined_call_operand.hbm [shape: f32[16,32], index: 5, kind: output, shape index: {}]  }
   0x1   :  { %12 = vsyncpa [#allocation4 + $0x1], 0 }
   0x2   :  { %13 = vsyncpa [#allocation7], 0 }
   0x3   :  { %14 = vsyncpa [#allocation5], 0 }
   0x4   :  { %16 = vsyncpa [#allocation5 + $0x1], 0  ;;  %s890_s18 = smov 0   ;;  %s892_s19 = smov 0  }
   0x5   :  { %s894_s20 = smov 0   ;;  %s896_s21 = smov 0  }
   0x6   :  { %s898_s22 = smov 0   ;;  %s900_s23 = smov 0  }
   0x7 LB: > { %s565_s24 = sadd.s32 4294967295, %s853_s23   ;;  %p567_p0 = scmp.ge.s32.totalorder %s853_s23, 1  ;;  %s853_s23 = sphi %s900_s23, %s22_s23   ;;  %s849_s22 = sphi %s898_s22, %s1064_s22   ;;  %s845_s21 = sphi %s896_s21, %s1063_s21   ;;  %s841_s20 = sphi %s894_s20, %s1062_s20   ;;  %s837_s19 = sphi %s892_s19, %s1061_s19   ;;  %s833_s18 = sphi %s890_s18, %s1060_s18  }
   0x8   : > { %p924_p1 = scmp.eq.s32.totalorder %s565_s24, 0  ;;  %p190_p2 = scmp.lt.s32.totalorder %s853_s23, 3 }
   0x9   : > { %s203_s28 = sshll.u32 %s1050_s1, 4  ;;  %s855_s30 = smov [#allocation6]   ;;  %s204_s28 = int_to_ptr.hbm [resolvable:$true] %s203_s28 }
   0xa   : > { %p932_p3 = pnand %p567_p0, %p190_p2  ;;  %s205_s6 = sshll.u32 %s855_s30, 4  ;;  %s206_s6 = int_to_ptr.vmem [resolvable:$true] %s205_s6 }
   0xb   : > { %p571_p6 = scmp.ge.s32.totalorder %s853_s23, 2  ;;  %s226_s9 = sshll.u32 %s1052_s3, 4  ;;  %s227_s9 = int_to_ptr.hbm [resolvable:$true] %s226_s9 }
   0xc   : > { %p597_p4 = pneg %p932_p3  ;;  %s856_s10 = smov 128  }
   0xd   : > { %s857_s11 = smov 8   ;;  %s858_s12 = smov [#allocation8]  }
   0xe   : > { %p598_p5 = pnand %p597_p4, %p924_p1  ;;  %s228_s13 = sshll.u32 %s858_s12, 4  ;;  %s229_s13 = int_to_ptr.vmem [resolvable:$true] %s228_s13 }
   0xf   : > { %s34_s14 = sadd.s32 1, %s849_s22  ;;  %s566_s15 = sadd.s32 4294967294, %s853_s23  }
  0x10   : > { %600 = dma.hbm_to_vmem [thread:$0]  (!%p598_p5), %s204_s28, 512, %s206_s6, [#allocation7], %s856_s10, %s856_s10, %s857_s11  }
  0x11   : > { %603 = dma.hbm_to_vmem [thread:$0]  (!%p598_p5), %s227_s9, 512, %s229_s13, [#allocation7], %s856_s10, %s856_s10, %s857_s11  }
  0x12   : > { %p36_p7 = scmp.ge.s32.totalorder %s34_s14, 2  ;;  %s41_s16 = sadd.s32 1, %s841_s20 }
  0x13   : > { %p48_p8 = scmp.ne.s32.totalorder %s841_s20, %s837_s19  ;;  %p49_p9 = scmp.eq.s32.totalorder %s853_s23, 0 }
  0x14   : > { %s1066_s14 = smov (%p36_p7, %s34_s14), 0  ;;  %p54_p10 = scmp.ne.s32.totalorder %s837_s19, %s833_s18 }
  0x15   : > { %s38_s17 = ssub.s32 %s849_s22, %s1066_s14  ;;  %p177_p11 = scmp.eq.s32.totalorder %s565_s24, 1 }
  0x16   : > { %p39_p12 = scmp.eq.s32.totalorder %s38_s17, 0  ;;  %p960_p13 = por %p924_p1, %p54_p10 }
  0x17   : > { %p964_p0 = por %p177_p11, %p48_p8  ;;  %p183_p2 = scmp.eq.s32.totalorder %s566_s15, 1 }
  0x18   : > { %s969_s28 = scalar_select %p39_p12, %s841_s20, %s41_s16  }
  0x19   : > { %p50_p4 = por %p49_p9, %p48_p8  ;;  %p971_p5 = por %p183_p2, %p54_p10 }
  0x1a   : > { %s245_s6 = sand.u32 1, %s841_s20   ;;  %s573_s24 = sshll.u32 %s849_s22, 3 }
  0x1b   : > { %p614_p7 = scmp.lt.s32.totalorder %s853_s23, 2  ;;  %s572_s7 = sshll.u32 %s245_s6, 3 }
  0x1c   : > { %s253_s10 = scalar_lea.hbm %s1049_s0, %s573_s24  ;;  %s249_s12 = scalar_lea.vmem [#allocation3], %s572_s7 }
  0x1d   : > { %s255_s11 = sshll.u32 %s253_s10, 4  ;;  %s257_s13 = sshll.u32 %s249_s12, 4  ;;  %s256_s11 = int_to_ptr.hbm [resolvable:$true] %s255_s11  ;;  %s258_s13 = int_to_ptr.vmem [resolvable:$true] %s257_s13 }
  0x1e   : > { %p605_p11 = pnand %p614_p7, %p50_p4  ;;  %s246_s15 = scalar_lea.sflag [#allocation4], %s245_s6 }
  0x1f   : > { %266 = sbr.rel (%p932_p3) target bundleno = 370 (0x172), region = 40  ;;  %s984_s16 = sand.u32 (!%p932_p3), 1, %s837_s19  }
  0x20   : > { %607 = dma.hbm_to_vmem [thread:$0]  (!%p605_p11), %s256_s11, 128, %s258_s13, %s246_s15  }
  0x21   : > { %s575_s17 = sshll.u32 (!%p932_p3), %s984_s16, 3  ;;  %s269_s24 = scalar_lea.sflag (!%p932_p3), [#allocation4], %s984_s16 }
  0x22   : > { %s272_s7 = scalar_lea.vmem (!%p932_p3), [#allocation3], %s575_s17 }
  0x24   : > { %820 = dma.done.wait (%p960_p13), %s269_s24, 128  }
  0x25   : > { %822 = vsyncadd (%p960_p13), %s269_s24, 4294967168 }
  0x26   : > { %824 = dma.done.wait (%p924_p1), [#allocation7], 1024  }
  0x27   : > { %826 = vsyncadd (%p924_p1), [#allocation7], 4294966272  ;;  %vm321_vm0 = vcmask 261120   ;;  %v859_v0 = vmov 0.0   ;;  %v327_v1 = vld [vmem:[#allocation6 + $0x18] sm:$0xff]  ;;  %v326_v2 = vld [vmem:[#allocation6 + $0x10] sm:$0xff] }
  0x28   : > { %322 = vst.msk [vmem:[#allocation2] sm:$0xff] %vm321_vm0, %v859_v0  ;;  %348 = vmatpush.msra.mxu0 %v327_v1  ;;  %v325_v3 = vld [vmem:[#allocation6 + $0x8] sm:$0xff]  ;;  %v324_v4 = vld [vmem:[#allocation6] sm:$0xff]  ;;  %v323_v5 = vld [vmem:[%s272_s7] sm:$0xff]  ;;  %s582_s26 = sshll.u32 %s845_s21, 3  ;;  %s312_s12 = scalar_lea.vmem [#allocation9], %s575_s17 }
  0x29   : > { %v400_v6 = vld [vmem:[#allocation8 + $0x18] sm:$0xff]  ;;  %v399_v7 = vld [vmem:[#allocation8 + $0x10] sm:$0xff]  ;;  %v398_v8 = vld [vmem:[#allocation8 + $0x8] sm:$0xff]  ;;  %s447_s9 = scalar_lea.hbm %s1054_s5, %s582_s26  ;;  %s449_s13 = sshll.u32 %s312_s12, 4  ;;  %s450_s13 = int_to_ptr.vmem [resolvable:$true] %s449_s13 }
  0x2a   : > { %349 = vmatpush.msra.mxu0 %v326_v2  ;;  %416 = vmatpush.msra.mxu1 %v400_v6  ;;  %v397_v9 = vld [vmem:[#allocation8] sm:$0xff]  ;;  %v671_v10 = vld [vmem:[%s1051_s2] ss:$0 sm:$0xff]  ;;  %s451_s15 = sshll.u32 %s447_s9, 4  ;;  %s437_s21 = scalar_lea.sflag [#allocation5], %s984_s16  ;;  %s452_s15 = int_to_ptr.hbm [resolvable:$true] %s451_s15 }
  0x2b   : > { %v672_v50 = vld [vmem:[%s1053_s4] ss:$0 sm:$0xff]  ;;  %s781_s24 = sshra.s32 %s452_s15, 4  ;;  %s787_s17 = scalar_lea.hbm %s1054_s5, 16  ;;  %s782_s24 = int_to_ptr.hbm [resolvable:$true] %s781_s24 }
  0x2c   : > { %350 = vmatpush.msra.mxu0 %v325_v3  ;;  %417 = vmatpush.msra.mxu1 %v399_v7  ;;  %s783_s7 = scalar_lea.hbm %s782_s24, 8  ;;  %p788_p9 = scmp.lt.s32.totalorder %s782_s24, %s1054_s5 }
  0x2d   : > { %p784_p1 = scmp.ne.s32.totalorder %s782_s24, %s783_s7  ;;  %p789_p10 = scmp.lt.s32.totalorder %s787_s17, %s783_s7 }
  0x2e   : > { %351 = vmatpush.msra.mxu0 %v324_v4  ;;  %418 = vmatpush.msra.mxu1 %v398_v8 }
  0x2f   : > { %579 = vmatmul.msk.f32.vlgmr.msra.gmra.mxu0 %vm321_vm0, %v323_v5  ;;  %v396_v47 = vld [vmem:[#allocation2] sm:$0xff]  ;;  %p785_p3 = pnand %p784_p1, %p964_p0  ;;  %p790_p12 = por %p789_p10, %p788_p9 }
  0x30   : > { %419 = vmatpush.msra.mxu1 %v397_v9 }
  0x31   : > { %p786_p8 = pneg %p785_p3 }
  0x33   : > { %p791_p13 = pnand %p790_p12, %p786_p8 }
  0xac   : > { %v353_v11 = vpop.f32.mrf.mxu0 }
  0xad   : > { %v354_v12 = vadd.f32 %v671_v10, %v353_v11 }
  0xaf   : > { %v357_v13 = vmul.f32 0.70710677, %v354_v12  ;;  %v356_v44 = vmul.f32 0.5, %v354_v12 }
  0xb1   : > { %v358_v14 = vand.u32 2147483647, %v357_v13  ;;  %vm391_vm5 = vcmp.lt.f32.partialorder %v357_v13, 0.0 }
  0xb3   : > { %v359_v15 = vmul.f32 0.3275911, %v358_v14  ;;  %v385_v26 = vmul.f32 %v358_v14, %v358_v14 }
  0xb5   : > { %v360_v16 = vadd.f32 1.0, %v359_v15  ;;  %v386_v30 = vsub.f32 0.0, %v385_v26 }
  0xb7   : > { %673 = vrcp.f32 %v360_v16  ;;  %v372_v20 = vand.u32 2147483648, %v360_v16  ;;  %v370_v22 = vand.u32 2147483647, %v360_v16  ;;  %vm366_vm2 = vweird.f32 %v360_v16 }
  0xb8   : > { %v387_v33 = vmul.f32 1.442695, %v386_v30 }
  0xb9   : > { %v373_v24 = vor.u32 1.1754944e-38, %v372_v20  ;;  %vm371_vm4 = vcmp.eq.f32.partialorder %v370_v22, 8.507059e+37 }
  0xba   : > { %675 = vpow2.f32 %v387_v33 }
  0xbd   : > { %v674_v17 = vpop.eup %673 }
  0xbe   : > { %v362_v18 = vmul.f32 %v674_v17, %v360_v16  ;;  %vm367_vm1 = vweird.f32 %v674_v17 }
  0xbf   : > { %vm368_vm3 = vmor %vm366_vm2, %vm367_vm1 }
  0xc0   : > { %v363_v19 = vsub.f32 1.0, %v362_v18  ;;  %v676_v39 = vpop.eup %675 }
  0xc2   : > { %v364_v21 = vmul.f32 %v674_v17, %v363_v19 }
  0xc4   : > { %v365_v23 = vadd.f32 %v674_v17, %v364_v21 }
  0xc6   : > { %v369_v25 = vsel %vm368_vm3, %v674_v17, %v365_v23 }
  0xc7   : > { %v374_v27 = vsel %vm371_vm4, %v373_v24, %v369_v25 }
  0xc8   : > { %v376_v28 = vmul.f32 1.0614054, %v374_v27 }
  0xca   : > { %v377_v29 = vadd.f32 -1.4531521, %v376_v28 }
  0xcc   : > { %v378_v31 = vmul.f32 %v377_v29, %v374_v27 }
  0xce   : > { %v379_v32 = vadd.f32 1.4214138, %v378_v31 }
  0xd0   : > { %v380_v34 = vmul.f32 %v379_v32, %v374_v27 }
  0xd2   : > { %v381_v35 = vadd.f32 -0.28449672, %v380_v34 }
  0xd4   : > { %v382_v36 = vmul.f32 %v381_v35, %v374_v27 }
  0xd6   : > { %v383_v37 = vadd.f32 0.2548296, %v382_v36 }
  0xd8   : > { %v384_v38 = vmul.f32 %v383_v37, %v374_v27 }
  0xda   : > { %v389_v40 = vmul.f32 %v676_v39, %v384_v38 }
  0xdc   : > { %v390_v41 = vsub.f32 1.0, %v389_v40 }
  0xde   : > { %v392_v42 = vsub.f32 0.0, %v390_v41 }
  0xe0   : > { %v393_v43 = vsel %vm391_vm5, %v392_v42, %v390_v41 }
  0xe1   : > { %v394_v45 = vadd.f32 1.0, %v393_v43 }
  0xe3   : > { %v395_v46 = vmul.f32 %v394_v45, %v356_v44 }
  0xe5   : > { %580 = vmatmul.msk.f32.vlgmr.msra.gmra.mxu1 %vm321_vm0, %v395_v46 }
 0x162   : > { %v421_v48 = vpop.f32.mrf.mxu1 }
 0x163   : > { %v424_v49 = vadd.f32 %v421_v48, %v396_v47 }
 0x165   : > { %425 = vst.msk [vmem:[#allocation2] sm:$0xff] %vm321_vm0, %v424_v49 }
 0x16c   : > { %v429_v51 = vld [vmem:[#allocation2] sm:$0xff] }
 0x16d   : > { %v434_v52 = vadd.f32 %v672_v50, %v429_v51 }
 0x16f   : > { %435 = vst.msk [vmem:[%s312_s12] sm:$0xff] %vm321_vm0, %v434_v52 }
 0x170   : > { %794 = shalt.err (!%p791_p13)
}
 0x171   : > { %595 = dma.vmem_to_hbm [thread:$0]  (%p964_p0), %s450_s13, 128, %s452_s15, %s437_s21  }
 0x172 PF: > { %s463_s16 = sand.u32 1, %s833_s18   ;;  %p609_p2 = pnand %p571_p6, %p971_p5 }
 0x173   : > { %s464_s8 = scalar_lea.sflag [#allocation5], %s463_s16 }
 0x174   : > { %p610_p4 = pneg %p609_p2 }
 0x176   : > { %828 = dma.done.wait (%p610_p4), %s464_s8, 128  }
 0x177   : > { %830 = vsyncadd (%p610_p4), %s464_s8, 4294967168  ;;  %s22_s23 = sadd.s32 1, %s853_s23   ;;  %s1060_s18 = smov %s837_s19 }
 0x178   : > { %p19_p7 = scmp.ge.s32.totalorder %s22_s23, 4   ;;  %s1061_s19 = smov %s841_s20 }
 0x179   : > { %s1062_s20 = smov %s969_s28  ;;  %s1063_s21 = smov %s849_s22 }
 0x17a   : > { %s1064_s22 = smov %s1066_s14  ;;  %21 = sbr.rel (!%p19_p7) target bundleno = 7 (0x7), region = 106 }
 0x17f   :  { %470 = vsyncpa [#allocation4], 1 }
 0x180   :  { %472 = vsyncpa [#allocation4 + $0x1], 1 }
 0x181   :  { %473 = vsyncpa [#allocation7], 1 }
 0x182   :  { %474 = vsyncpa [#allocation5], 1 }
 0x183   :  { %476 = vsyncpa [#allocation5 + $0x1], 1 }

</bundles_post_ra>
